<compile_context>
chip_gen: v7x
topology: tpu7x:2x2x1
jax: 0.10.0
libtpu: 0.0.40
codegen_flags: <defaults>
</compile_context>

<pallas_src>
import jax
import jax.numpy as jnp
from jax import lax
from jax.experimental import pallas as pl
from jax.experimental.pallas import tpu as pltpu

LN_EPS = 1e-5  # torch.nn.LayerNorm default


def _round_up(x, m):
    return (x + m - 1) // m * m


def _tpu_caps():
    """(device_kind lowercase, physical VMEM bytes) with safe fallbacks."""
    kind = ""
    try:
        kind = jax.devices()[0].device_kind.lower()
    except Exception:
        pass
    phys = None
    try:
        phys = int(pltpu.get_tpu_info().vmem_capacity_bytes)
    except Exception:
        phys = None
    if not phys:
        phys = (64 if "v7" in kind else 128) * 1024 * 1024
    return kind, phys


def _pick_row_tile(M, pack, target):
    """Pick (tm, Mp). Prefer a divisor of M so no row pad / output slice is needed."""
    target = max(pack, min(target, _round_up(M, pack)))
    if M % pack == 0:
        best = 0
        d = pack
        lim = min(M, target)
        while d <= lim:
            if M % d == 0:
                best = d
            d += pack
        if best and (4 * best >= target or best == M):
            return best, M
    tm = _round_up(target, pack)
    return tm, _round_up(M, tm)


# ----------------------------------------------------------------------------
# Kernel bodies
# ----------------------------------------------------------------------------
def _make_fused_kernel(d_model, d_pad, mxu_dtype):
    """Resident-W path: one grid axis over row tiles."""
    inv_d = 1.0 / float(d_model)

    def kernel(x_ref, w_ref, b_ref, g_ref, beta_ref, o_ref):
        # x_ref: (tm, Dp)  w_ref: (Dp, Dp)  b/g/beta: (1, Dp) f32  o_ref: (tm, Dp)
        x = x_ref[...]

        # layer(x) = x @ W (+ b below); MXU in mxu_dtype, f32 accumulate.
        y = jnp.dot(x.astype(mxu_dtype), w_ref[...],
                    preferred_element_type=jnp.float32)

        # residual + bias in f32 for the LayerNorm statistics.
        h = x.astype(jnp.float32) + y + b_ref[...]

        # Padded feature columns of h are exactly 0 (x, W, b zero-padded), so
        # sum(h)/d_model is the true mean.  Centered padded columns equal
        # -mean; remove their contribution analytically (no per-element mask).
        mean = jnp.sum(h, axis=-1, keepdims=True) * inv_d
        cent = h - mean
        sq = jnp.sum(cent * cent, axis=-1, keepdims=True)
        if d_pad != d_model:
            sq = sq - float(d_pad - d_model) * (mean * mean)
        var = sq * inv_d
        inv = lax.rsqrt(var + LN_EPS)

        # gamma/beta are zero-padded -> padded output columns come out 0.
        o_ref[...] = (cent * inv * g_ref[...] + beta_ref[...]).astype(o_ref.dtype)

    return kernel


def _make_ktiled_kernel(d_model, d_pad, mxu_dtype):
    """Streamed-W path: grid = (row tiles, K slabs), K last and 'arbitrary'."""
    inv_d = 1.0 / float(d_model)

    def kernel(xk_ref, w_ref, xf_ref, b_ref, g_ref, beta_ref, o_ref, acc_ref):
        # xk_ref: (tm, tk)  w_ref: (tk, Dp)  xf_ref: (tm, Dp)  acc_ref: (tm, Dp) f32
        k = pl.program_id(1)

        @pl.when(k == 0)
        def _():
            acc_ref[...] = jnp.zeros_like(acc_ref)

        acc_ref[...] += jnp.dot(xk_ref[...].astype(mxu_dtype), w_ref[...],
                                preferred_element_type=jnp.float32)

        @pl.when(k == pl.num_programs(1) - 1)
        def _():
            h = acc_ref[...] + xf_ref[...].astype(jnp.float32) + b_ref[...]
            mean = jnp.sum(h, axis=-1, keepdims=True) * inv_d
            cent = h - mean
            sq = jnp.sum(cent * cent, axis=-1, keepdims=True)
            if d_pad != d_model:
                sq = sq - float(d_pad - d_model) * (mean * mean)
            var = sq * inv_d
            inv = lax.rsqrt(var + LN_EPS)
            o_ref[...] = (cent * inv * g_ref[...] + beta_ref[...]).astype(o_ref.dtype)

    return kernel


# ----------------------------------------------------------------------------
# Wrapper
# ----------------------------------------------------------------------------
def residual_layernorm(x, w, b, gamma, beta, *, tm=None, tk=None,
                       mxu_dtype=None, force_k_tiling=False):
    """x: (batch, seq, d_model). Returns LayerNorm(x + x @ w + b).

    mxu_dtype: dtype fed to the MXU (default: x.dtype, i.e. exact for f32
    inputs; pass jnp.bfloat16 to trade accuracy for ~3-4x matmul speed on
    f32 inputs).  Residual / LN math is always f32.
    """
    batch, seq, d_model = x.shape
    assert w.shape == (d_model, d_model), f"{w.shape} != {(d_model, d_model)}"

    if mxu_dtype is None:
        mxu_dtype = x.dtype
    mxu_dtype = jnp.dtype(mxu_dtype)

    kind, phys_vmem = _tpu_caps()
    is_v5 = "v5" in kind
    is_v7 = "v7" in kind
    budget = int(phys_vmem * 0.85)

    # Lane-dense feature dim; 256-align on the 2x256x256 MXUs (v6e/v7x).
    lane = 256 if (not is_v5 and d_model > 128) else 128
    Dp = _round_up(d_model, lane)

    x_isz = jnp.dtype(x.dtype).itemsize
    o_isz = x_isz
    w_isz = mxu_dtype.itemsize
    pack = {4: 8, 2: 16, 1: 32}.get(x_isz, 8)   # sublane packing of x dtype

    M = batch * seq

    # ---- VMEM footprint models (include f32 intermediates, not just I/O) ----
    def fused_bytes(t):
        return (2 * t * Dp * x_isz          # x row tiles (double-buffered)
                + 2 * t * Dp * o_isz        # out tiles (double-buffered)
                + Dp * Dp * w_isz           # W resident (Buffered(1))
                + 3 * Dp * 4                # bias / gamma / beta (Buffered(1))
                + 3 * t * Dp * 4)           # f32 intermediates (y, h, cent)

    def ktiled_bytes(t, tkk):
        return (2 * t * tkk * x_isz         # x K-tiles
                + 2 * t * Dp * x_isz        # x full rows (residual)
                + 2 * tkk * Dp * w_isz      # streamed W slabs
                + 2 * t * Dp * o_isz        # out tiles
                + t * Dp * 4                # f32 accumulator scratch
                + 3 * Dp * 4                # bias / gamma / beta
                + 3 * t * Dp * 4)           # f32 epilogue temporaries

    # ---- choose path + tile targets -----------------------------------------
    if tm is None:
        # small-D regime is HBM-bound: bigger row tiles on v5e/v6e.
        tm_target = 512 if (Dp <= 1024 and not is_v7) else 256
    else:
        tm_target = tm
    tm_target = max(pack, _round_up(tm_target, pack))

    use_k = bool(force_k_tiling)
    if not use_k:
        t = tm_target
        while fused_bytes(t) > budget and t > pack:
            t = max(pack, (t // 2) // pack * pack)
        if fused_bytes(t) <= budget:
            tm_target = t
        else:
            use_k = True            # resident W does not fit -> stream K slabs

    tk_eff = None
    if use_k:
        tk_target = tk if tk is not None else 512
        tk_eff = 128                # Dp is always a multiple of 128
        c = 128
        while c <= min(Dp, tk_target):
            if Dp % c == 0:
                tk_eff = c
            c += 128
        t = tm_target
        while ktiled_bytes(t, tk_eff) > budget and t > pack:
            t = max(pack, (t // 2) // pack * pack)
        tm_target = t

    tm_eff, Mp = _pick_row_tile(M, pack, tm_target)

    # ---- wrapper-side padding / dtype plumbing ------------------------------
    x2 = x.reshape(M, d_model)
    if Mp != M or Dp != d_model:
        x2 = jnp.pad(x2, ((0, Mp - M), (0, Dp - d_model)))

    wp = w.astype(mxu_dtype)
    if Dp != d_model:
        wp = jnp.pad(wp, ((0, Dp - d_model), (0, Dp - d_model)))

    def _padvec(v):
        v = v.astype(jnp.float32).reshape(1, d_model)
        if Dp != d_model:
            v = jnp.pad(v, ((0, 0), (0, Dp - d_model)))
        return v

    b2, g2, be2 = _padvec(b), _padvec(gamma), _padvec(beta)

    est = ktiled_bytes(tm_eff, tk_eff) if use_k else fused_bytes(tm_eff)
    vmem_limit = int(min(budget, max(32 * 1024 * 1024, int(est * 1.25))))

    cost = pl.CostEstimate(
        flops=int(2 * Mp * Dp * Dp),
        transcendentals=int(Mp),                       # one rsqrt per row
        bytes_accessed=int(Mp * Dp * (x_isz + o_isz) + Dp * Dp * w_isz + 3 * Dp * 4),
    )

    if not use_k:
        kernel = _make_fused_kernel(d_model, Dp, mxu_dtype)
        out = pl.pallas_call(
            kernel,
            out_shape=jax.ShapeDtypeStruct((Mp, Dp), x.dtype),
            grid_spec=pltpu.PrefetchScalarGridSpec(
                num_scalar_prefetch=0,
                grid=(Mp // tm_eff,),
                in_specs=[
                    pl.BlockSpec((tm_eff, Dp), lambda i: (i, 0)),         # x rows
                    pl.BlockSpec((Dp, Dp), lambda i: (0, 0),              # W resident
                                 pipeline_mode=pl.Buffered(1)),
                    pl.BlockSpec((1, Dp), lambda i: (0, 0),               # bias
                                 pipeline_mode=pl.Buffered(1)),
                    pl.BlockSpec((1, Dp), lambda i: (0, 0),               # gamma
                                 pipeline_mode=pl.Buffered(1)),
                    pl.BlockSpec((1, Dp), lambda i: (0, 0),               # beta
                                 pipeline_mode=pl.Buffered(1)),
                ],
                out_specs=pl.BlockSpec((tm_eff, Dp), lambda i: (i, 0)),
            ),
            compiler_params=pltpu.CompilerParams(
                dimension_semantics=("parallel",),
                vmem_limit_bytes=vmem_limit,
            ),
            cost_estimate=cost,
        )(x2, wp, b2, g2, be2)
    else:
        kernel = _make_ktiled_kernel(d_model, Dp, mxu_dtype)
        out = pl.pallas_call(
            kernel,
            out_shape=jax.ShapeDtypeStruct((Mp, Dp), x.dtype),
            grid_spec=pltpu.PrefetchScalarGridSpec(
                num_scalar_prefetch=0,
                grid=(Mp // tm_eff, Dp // tk_eff),
                in_specs=[
                    pl.BlockSpec((tm_eff, tk_eff), lambda i, k: (i, k)),   # x K-tiles
                    pl.BlockSpec((tk_eff, Dp), lambda i, k: (k, 0)),       # W K-slabs
                    pl.BlockSpec((tm_eff, Dp), lambda i, k: (i, 0)),       # x full rows
                    pl.BlockSpec((1, Dp), lambda i, k: (0, 0),
                                 pipeline_mode=pl.Buffered(1)),            # bias
                    pl.BlockSpec((1, Dp), lambda i, k: (0, 0),
                                 pipeline_mode=pl.Buffered(1)),            # gamma
                    pl.BlockSpec((1, Dp), lambda i, k: (0, 0),
                                 pipeline_mode=pl.Buffered(1)),            # beta
                ],
                out_specs=pl.BlockSpec((tm_eff, Dp), lambda i, k: (i, 0)),
                scratch_shapes=[pltpu.VMEM((tm_eff, Dp), jnp.float32)],
            ),
            compiler_params=pltpu.CompilerParams(
                dimension_semantics=("parallel", "arbitrary"),
                vmem_limit_bytes=vmem_limit,
            ),
            cost_estimate=cost,
        )(x2, wp, x2, b2, g2, be2)

    if Mp != M or Dp != d_model:
        out = out[:M, :d_model]
    return out.reshape(batch, seq, d_model)


# ----------------------------------------------------------------------------
# Reference + test
# ----------------------------------------------------------------------------
def _reference(x, w, b, gamma, beta):
    h = x + (jnp.einsum("bsd,df->bsf", x, w) + b)
    mean = jnp.mean(h, axis=-1, keepdims=True)
    var = jnp.mean((h - mean) ** 2, axis=-1, keepdims=True)
    return (h - mean) * lax.rsqrt(var + LN_EPS) * gamma + beta


def _make_inputs(key, batch, seq, d_model, dtype=jnp.float32):
    kx, kw, kb, kg, kbe = jax.random.split(key, 5)
    x = jax.random.normal(kx, (batch, seq, d_model), dtype=dtype)
    # Linear(d_model, d_model): weight stored pre-transposed as (in, out)
    w = jax.random.normal(kw, (d_model, d_model), dtype=dtype) * (1.0 / d_model ** 0.5)
    b = jax.random.normal(kb, (d_model,), dtype=dtype) * 0.02
    gamma = 1.0 + 0.1 * jax.random.normal(kg, (d_model,), dtype=dtype)
    beta = 0.1 * jax.random.normal(kbe, (d_model,), dtype=dtype)
    return x, w, b, gamma, beta


if __name__ == "__main__":
    key = jax.random.PRNGKey(0)
    k1, k2 = jax.random.split(key)

    # --- test 1: small d_model, fused resident-W path -----------------------
    batch, seq, d_model = 2, 8, 32
    x, w, b, gamma, beta = _make_inputs(k1, batch, seq, d_model)
    out = jax.block_until_ready(residual_layernorm(x, w, b, gamma, beta))
    ref = _reference(x, w, b, gamma, beta)
    assert out.shape == (batch, seq, d_model)
    assert jnp.allclose(out, ref, atol=1e-4, rtol=1e-4), "fused path mismatch"

    # --- test 2: force the K-tiled (streamed-W) path with 2 K steps ---------
    d_model2 = 256
    x2, w2, b2, g2, be2 = _make_inputs(k2, batch, seq, d_model2)
    out2 = jax.block_until_ready(
        residual_layernorm(x2, w2, b2, g2, be2, tk=128, force_k_tiling=True))
    ref2 = _reference(x2, w2, b2, g2, be2)
    assert out2.shape == (batch, seq, d_model2)
    assert jnp.allclose(out2, ref2, atol=5e-4, rtol=5e-4), "k-tiled path mismatch"

    print("KERNEL_OK")
</pallas_src>

<mosaic_0001>
module attributes {stable_mosaic.version = 11 : i64} {
  func.func @kernel(%arg0: i32, %arg1: memref<16x128xf32, #tpu.memory_space<vmem>>, %arg2: memref<128x128xf32, #tpu.memory_space<vmem>>, %arg3: memref<1x128xf32, #tpu.memory_space<vmem>>, %arg4: memref<1x128xf32, #tpu.memory_space<vmem>>, %arg5: memref<1x128xf32, #tpu.memory_space<vmem>>, %arg6: memref<16x128xf32, #tpu.memory_space<vmem>>) attributes {dimension_semantics = [#tpu.dimension_semantics<parallel>], iteration_bounds = array<i64: 1>, scalar_prefetch = 0 : i64, scratch_operands = 0 : i64, tpu.core_type = #tpu.core_type<tc>, window_params = [{transform_indices = @transform_0, window_bounds = array<i64: 16, 128>}, {pipeline_mode = #tpu.pipeline_mode<synchronous>, transform_indices = @transform_1, window_bounds = array<i64: 128, 128>}, {pipeline_mode = #tpu.pipeline_mode<synchronous>, transform_indices = @transform_2, window_bounds = array<i64: 1, 128>}, {pipeline_mode = #tpu.pipeline_mode<synchronous>, transform_indices = @transform_3, window_bounds = array<i64: 1, 128>}, {pipeline_mode = #tpu.pipeline_mode<synchronous>, transform_indices = @transform_4, window_bounds = array<i64: 1, 128>}, {transform_indices = @transform_5, window_bounds = array<i64: 16, 128>}]} {
    %c0 = arith.constant 0 : index
    %c0_0 = arith.constant 0 : index
    %0 = vector.load %arg1[%c0, %c0_0] : memref<16x128xf32, #tpu.memory_space<vmem>>, vector<16x128xf32>
    %c0_1 = arith.constant 0 : index
    %c0_2 = arith.constant 0 : index
    %1 = vector.load %arg2[%c0_1, %c0_2] : memref<128x128xf32, #tpu.memory_space<vmem>>, vector<128x128xf32>
    %cst = arith.constant dense<0.000000e+00> : vector<16x128xf32>
    %2 = tpu.matmul %0, %1, %cst {dimension_numbers = #tpu.dot_dimension_numbers<[1], [0], [0], [1], [0, 0, 1, 1], [], []>} : vector<16x128xf32>, vector<128x128xf32>, vector<16x128xf32> -> vector<16x128xf32>
    %3 = arith.addf %0, %2 : vector<16x128xf32>
    %c0_3 = arith.constant 0 : index
    %c0_4 = arith.constant 0 : index
    %4 = vector.load %arg3[%c0_3, %c0_4] : memref<1x128xf32, #tpu.memory_space<vmem>>, vector<1x128xf32>
    %5 = vector.broadcast %4 : vector<1x128xf32> to vector<16x128xf32>
    %6 = arith.addf %3, %5 : vector<16x128xf32>
    %cst_5 = arith.constant dense<0.000000e+00> : vector<16xf32>
    %7 = vector.multi_reduction <add>, %6, %cst_5 [1] : vector<16x128xf32> to vector<16xf32>
    %8 = vector.shape_cast %7 : vector<16xf32> to vector<16x1xf32>
    %cst_6 = arith.constant 3.125000e-02 : f32
    %9 = vector.broadcast %cst_6 : f32 to vector<16x1xf32>
    %10 = arith.mulf %8, %9 : vector<16x1xf32>
    %11 = vector.broadcast %10 : vector<16x1xf32> to vector<16x128xf32>
    %12 = arith.subf %6, %11 : vector<16x128xf32>
    %13 = arith.mulf %12, %12 : vector<16x128xf32>
    %cst_7 = arith.constant dense<0.000000e+00> : vector<16xf32>
    %14 = vector.multi_reduction <add>, %13, %cst_7 [1] : vector<16x128xf32> to vector<16xf32>
    %15 = vector.shape_cast %14 : vector<16xf32> to vector<16x1xf32>
    %16 = arith.mulf %10, %10 : vector<16x1xf32>
    %cst_8 = arith.constant 9.600000e+01 : f32
    %17 = vector.broadcast %cst_8 : f32 to vector<16x1xf32>
    %18 = arith.mulf %17, %16 : vector<16x1xf32>
    %19 = arith.subf %15, %18 : vector<16x1xf32>
    %cst_9 = arith.constant 3.125000e-02 : f32
    %20 = vector.broadcast %cst_9 : f32 to vector<16x1xf32>
    %21 = arith.mulf %19, %20 : vector<16x1xf32>
    %cst_10 = arith.constant 9.99999974E-6 : f32
    %22 = vector.broadcast %cst_10 : f32 to vector<16x1xf32>
    %23 = arith.addf %21, %22 : vector<16x1xf32>
    %24 = math.rsqrt %23 : vector<16x1xf32>
    %25 = vector.broadcast %24 : vector<16x1xf32> to vector<16x128xf32>
    %26 = arith.mulf %12, %25 : vector<16x128xf32>
    %c0_11 = arith.constant 0 : index
    %c0_12 = arith.constant 0 : index
    %27 = vector.load %arg4[%c0_11, %c0_12] : memref<1x128xf32, #tpu.memory_space<vmem>>, vector<1x128xf32>
    %28 = vector.broadcast %27 : vector<1x128xf32> to vector<16x128xf32>
    %29 = arith.mulf %26, %28 : vector<16x128xf32>
    %c0_13 = arith.constant 0 : index
    %c0_14 = arith.constant 0 : index
    %30 = vector.load %arg5[%c0_13, %c0_14] : memref<1x128xf32, #tpu.memory_space<vmem>>, vector<1x128xf32>
    %31 = vector.broadcast %30 : vector<1x128xf32> to vector<16x128xf32>
    %32 = arith.addf %29, %31 : vector<16x128xf32>
    %c0_15 = arith.constant 0 : index
    %c0_16 = arith.constant 0 : index
    %33 = vector.load %arg6[%c0_15, %c0_16] : memref<16x128xf32, #tpu.memory_space<vmem>>, vector<16x128xf32>
    tpu.vector_store %arg6[%c0_15, %c0_16], %32 {strides = array<i32>} : memref<16x128xf32, #tpu.memory_space<vmem>>, vector<16x128xf32>,
    return
  }
  func.func @transform_0(%arg0: i32) -> (i32, i32) {
    %c0_i32 = arith.constant 0 : i32
    %c0_i32_0 = arith.constant 0 : i32
    return %arg0, %c0_i32 : i32, i32
  }
  func.func @transform_1(%arg0: i32) -> (i32, i32) {
    %c0_i32 = arith.constant 0 : i32
    %c0_i32_0 = arith.constant 0 : i32
    %c0_i32_1 = arith.constant 0 : i32
    return %c0_i32, %c0_i32_0 : i32, i32
  }
  func.func @transform_2(%arg0: i32) -> (i32, i32) {
    %c0_i32 = arith.constant 0 : i32
    %c0_i32_0 = arith.constant 0 : i32
    %c0_i32_1 = arith.constant 0 : i32
    return %c0_i32, %c0_i32_0 : i32, i32
  }
  func.func @transform_3(%arg0: i32) -> (i32, i32) {
    %c0_i32 = arith.constant 0 : i32
    %c0_i32_0 = arith.constant 0 : i32
    %c0_i32_1 = arith.constant 0 : i32
    return %c0_i32, %c0_i32_0 : i32, i32
  }
  func.func @transform_4(%arg0: i32) -> (i32, i32) {
    %c0_i32 = arith.constant 0 : i32
    %c0_i32_0 = arith.constant 0 : i32
    %c0_i32_1 = arith.constant 0 : i32
    return %c0_i32, %c0_i32_0 : i32, i32
  }
  func.func @transform_5(%arg0: i32) -> (i32, i32) {
    %c0_i32 = arith.constant 0 : i32
    %c0_i32_0 = arith.constant 0 : i32
    return %arg0, %c0_i32 : i32, i32
  }
}

</mosaic_0001>

<bundles_post_ra>
// kernel: tpu_custom_call.1
= control target key start
LH: loop header
LB: loop body
LE: loop exit
PB: predicated region body
PF: predicated region fallthrough
CT: control target
= control target key end

     0   :  { %10 = vsyncpa [#allocation3], 0  ;;  %s477_s0 = inlined_call_operand.hbm [shape: f32[16,128], index: 0, kind: input, shape index: {}]   ;;  %s478_s1 = inlined_call_operand.hbm [shape: f32[128,128], index: 1, kind: input, shape index: {}]   ;;  %s479_s2 = inlined_call_operand.vmem [shape: f32[1,128], index: 2, kind: input, shape index: {}]   ;;  %s480_s3 = inlined_call_operand.vmem [shape: f32[1,128], index: 3, kind: input, shape index: {}]   ;;  %s481_s4 = inlined_call_operand.vmem [shape: f32[1,128], index: 4, kind: input, shape index: {}]   ;;  %s482_s5 = inlined_call_operand.hbm [shape: f32[16,128], index: 5, kind: output, shape index: {}]  }
   0x1   :  { %11 = vsyncpa [#allocation6], 0 }
   0x2   :  { %12 = vsyncpa [#allocation4], 0  ;;  %s388_s18 = smov [#allocation2]   ;;  %s316_s22 = scalar_lea.hbm %s477_s0, 256 }
   0x3   :  { %s18_s19 = sshll.u32 %s388_s18, 4  ;;  %p317_p0 = scmp.ne.s32.totalorder %s477_s0, %s316_s22  ;;  %s19_s19 = int_to_ptr.vmem [resolvable:$true] %s18_s19 }
   0x4   :  { %p320_p1 = scmp.lt.u32.totalorder %s316_s22, %s477_s0 }
   0x6   :  { %p322_p2 = pnand %p320_p1, %p317_p0 }
   0x8   :  { %325 = shalt.err (!%p322_p2)
}
   0x9   :  { %s326_s27 = scalar_lea.vmem %s19_s19, 256  ;;  %p331_p4 = scmp.lt.s32.totalorder %s19_s19, %s19_s19 }
   0xa   :  { %p327_p3 = scmp.ne.s32.totalorder %s19_s19, %s326_s27  ;;  %p332_p5 = scmp.lt.s32.totalorder %s326_s27, %s326_s27 }
   0xc   :  { %p333_p6 = por %p332_p5, %p331_p4 }
   0xe   :  { %p334_p7 = pnand %p333_p6, %p327_p3 }
  0x10   :  { %337 = shalt.err (!%p334_p7)
}
  0x11   :  { %s389_s28 = smov 128   ;;  %s390_s29 = smov 8  }
  0x12   :  { %24 = dma.hbm_to_vmem [thread:$0]  %s477_s0, 256, %s19_s19, [#allocation3], %s389_s28, %s389_s28, %s390_s29  }
  0x13   :  { %s391_s7 = smov [#allocation5]   ;;  %s338_s11 = scalar_lea.hbm %s478_s1, 2048 }
  0x14   :  { %s30_s8 = sshll.u32 %s391_s7, 4  ;;  %p339_p8 = scmp.ne.s32.totalorder %s478_s1, %s338_s11  ;;  %s31_s8 = int_to_ptr.vmem [resolvable:$true] %s30_s8 }
  0x15   :  { %p342_p9 = scmp.lt.u32.totalorder %s338_s11, %s478_s1 }
  0x17   :  { %p344_p10 = pnand %p342_p9, %p339_p8 }
  0x19   :  { %347 = shalt.err (!%p344_p10)
}
  0x1a   :  { %s348_s16 = scalar_lea.vmem %s31_s8, 2048  ;;  %p353_p12 = scmp.lt.s32.totalorder %s31_s8, %s31_s8 }
  0x1b   :  { %p349_p11 = scmp.ne.s32.totalorder %s31_s8, %s348_s16  ;;  %p354_p13 = scmp.lt.s32.totalorder %s348_s16, %s348_s16 }
  0x1d   :  { %p355_p0 = por %p354_p13, %p353_p12 }
  0x1f   :  { %p356_p1 = pnand %p355_p0, %p349_p11 }
  0x21   :  { %359 = shalt.err (!%p356_p1)
}
  0x22   :  { %36 = dma.hbm_to_vmem [thread:$0]  %s478_s1, 2048, %s31_s8, [#allocation6], %s389_s28, %s389_s28, %s390_s29  }
  0x23   :  { %382 = dma.done.wait [#allocation3], 256  }
  0x24   :  { %383 = vsyncadd [#allocation3], 4294967040 }
  0x25   :  { %384 = dma.done.wait [#allocation6], 2048  }
  0x26   :  { %385 = vsyncadd [#allocation6], 4294965248  ;;  %v51_v0 = vld [vmem:[#allocation5] sm:$0xff]  ;;  %v52_v1 = vld [vmem:[#allocation5 + $0x8] sm:$0xff]  ;;  %s392_s22 = smov [#allocation7]  }
  0x27   :  { %v53_v2 = vld [vmem:[#allocation5 + $0x10] sm:$0xff]  ;;  %v275_v3 = vpack.c.bf16 %v52_v1, %v51_v0  ;;  %v54_v4 = vld [vmem:[#allocation5 + $0x18] sm:$0xff]  ;;  %v55_v6 = vld [vmem:[#allocation5 + $0x20] sm:$0xff]  ;;  %s206_s23 = sshll.u32 %s392_s22, 4  ;;  %s207_s23 = int_to_ptr.vmem [resolvable:$true] %s206_s23 }
  0x28   :  { %v279_v5 = vpack.c.bf16 %v54_v4, %v53_v2  ;;  %v56_v7 = vld [vmem:[#allocation5 + $0x28] sm:$0xff]  ;;  %v49_v9 = vld [vmem:[#allocation2] sm:$0xff]  ;;  %v58_v11 = vld [vmem:[#allocation5 + $0x38] sm:$0xff]  ;;  %s360_s24 = scalar_lea.vmem %s207_s23, 256  ;;  %p365_p3 = scmp.lt.s32.totalorder %s207_s23, %s207_s23 }
  0x29   :  { %276 = vmatprep.subr.bf16.mxu0 %v275_v3  ;;  %v283_v8 = vpack.c.bf16 %v56_v7, %v55_v6  ;;  %v57_v10 = vld [vmem:[#allocation5 + $0x30] sm:$0xff]  ;;  %272 = vmatprep.mubr.f32.mxu0 %v49_v9  ;;  %v59_v13 = vld [vmem:[#allocation5 + $0x40] sm:$0xff]  ;;  %v60_v14 = vld [vmem:[#allocation5 + $0x48] sm:$0xff]  ;;  %p361_p2 = scmp.ne.s32.totalorder %s207_s23, %s360_s24  ;;  %p366_p4 = scmp.lt.s32.totalorder %s360_s24, %s360_s24 }
  0x2a   :  { %278 = vmatpush3.bf16.msra.mxu0 %v275_v3  ;;  %v287_v12 = vpack.c.bf16 %v58_v11, %v57_v10  ;;  %v291_v15 = vpack.c.bf16 %v60_v14, %v59_v13  ;;  %v61_v16 = vld [vmem:[#allocation5 + $0x50] sm:$0xff]  ;;  %v62_v17 = vld [vmem:[#allocation5 + $0x58] sm:$0xff]  ;;  %v63_v19 = vld [vmem:[#allocation5 + $0x60] sm:$0xff] }
  0x2b   :  { %280 = vmatprep.subr.bf16.mxu0 %v279_v5  ;;  %v295_v18 = vpack.c.bf16 %v62_v17, %v61_v16  ;;  %v64_v20 = vld [vmem:[#allocation5 + $0x68] sm:$0xff]  ;;  %v65_v22 = vld [vmem:[#allocation5 + $0x70] sm:$0xff]  ;;  %v66_v23 = vld [vmem:[#allocation5 + $0x78] sm:$0xff]  ;;  %p367_p5 = por %p366_p4, %p365_p3 }
  0x2c   :  { %v299_v21 = vpack.c.bf16 %v64_v20, %v63_v19  ;;  %v303_v24 = vpack.c.bf16 %v66_v23, %v65_v22  ;;  %v50_v25 = vld [vmem:[#allocation2 + $0x8] sm:$0xff]  ;;  %v219_v28 = vld [vmem:[%s479_s2] ss:$0 sm:$0xff] }
  0x2d   :  { %v220_v54 = vld [vmem:[%s480_s3] ss:$0 sm:$0xff]  ;;  %p368_p6 = pnand %p367_p5, %p361_p2 }
  0x2e   :  { %282 = vmatpush3.bf16.msra.mxu0 %v279_v5  ;;  %v221_v56 = vld [vmem:[%s481_s4] ss:$0 sm:$0xff] }
  0x2f   :  { %284 = vmatprep.subr.bf16.mxu0 %v283_v8 }
  0x32   :  { %286 = vmatpush3.bf16.msra.mxu0 %v283_v8 }
  0x33   :  { %288 = vmatprep.subr.bf16.mxu0 %v287_v12 }
  0x36   :  { %290 = vmatpush3.bf16.msra.mxu0 %v287_v12 }
  0x37   :  { %292 = vmatprep.subr.bf16.mxu0 %v291_v15 }
  0x3a   :  { %294 = vmatpush3.bf16.msra.mxu0 %v291_v15 }
  0x3b   :  { %296 = vmatprep.subr.bf16.mxu0 %v295_v18 }
  0x3e   :  { %298 = vmatpush3.bf16.msra.mxu0 %v295_v18 }
  0x3f   :  { %300 = vmatprep.subr.bf16.mxu0 %v299_v21 }
  0x42   :  { %302 = vmatpush3.bf16.msra.mxu0 %v299_v21 }
  0x43   :  { %304 = vmatprep.subr.bf16.mxu0 %v303_v24 }
  0x46   :  { %306 = vmatpush3.bf16.msra.mxu0 %v303_v24 }
  0x49   :  { %273 = vmatmul.mubr.f32.vlgmr.msra.gmra.mrb[0].mxu0 %v50_v25 }
 0x11c   :  { %v274_v26 = vpop.f32.mrb[0].mxu0 }
 0x11d   :  { %v133_v27 = vpop.f32.mrb[1].mxu0  ;;  %v143_v30 = vadd.f32 %v274_v26, %v50_v25 }
 0x11e   :  { %v142_v29 = vadd.f32 %v133_v27, %v49_v9 }
 0x11f   :  { %v152_v32 = vadd.f32 %v219_v28, %v143_v30 }
 0x120   :  { %v151_v31 = vadd.f32 %v219_v28, %v142_v29 }
 0x122   :  { %153 = vadd.xlane.f32.xlu0 %v151_v31 }
 0x126   :  { %155 = vadd.xlane.f32.xlu0 %v152_v32 }
 0x1af   :  { %v154_v33 = vpop.xlane.xlu0 %153 }
 0x1b0   :  { %v157_v34 = vmul.f32 0.03125, %v154_v33 }
 0x1b2   :  { %v159_v35 = vsub.f32 %v151_v31, %v157_v34  ;;  %v167_v41 = vmul.f32 %v157_v34, %v157_v34 }
 0x1b3   :  { %v156_v36 = vpop.xlane.xlu0 %155 }
 0x1b4   :  { %v158_v37 = vmul.f32 0.03125, %v156_v36  ;;  %v161_v38 = vmul.f32 %v159_v35, %v159_v35  ;;  %v169_v43 = vmul.f32 96.0, %v167_v41 }
 0x1b6   :  { %v160_v39 = vsub.f32 %v152_v32, %v158_v37  ;;  %163 = vadd.xlane.f32.xlu1 %v161_v38  ;;  %v168_v42 = vmul.f32 %v158_v37, %v158_v37 }
 0x1b8   :  { %v162_v40 = vmul.f32 %v160_v39, %v160_v39  ;;  %v170_v46 = vmul.f32 96.0, %v168_v42 }
 0x1ba   :  { %165 = vadd.xlane.f32.xlu1 %v162_v40 }
 0x243   :  { %v164_v44 = vpop.xlane.xlu1 %163 }
 0x244   :  { %v171_v45 = vsub.f32 %v164_v44, %v169_v43 }
 0x246   :  { %v173_v47 = vmul.f32 0.03125, %v171_v45 }
 0x247   :  { %v166_v48 = vpop.xlane.xlu1 %165 }
 0x248   :  { %v175_v49 = vadd.f32 1e-05, %v173_v47  ;;  %v172_v50 = vsub.f32 %v166_v48, %v170_v46 }
 0x24a   :  { %312 = vrsqrt.f32 %v175_v49  ;;  %v174_v51 = vmul.f32 0.03125, %v172_v50 }
 0x24c   :  { %v176_v52 = vadd.f32 1e-05, %v174_v51 }
 0x24e   :  { %314 = vrsqrt.f32 %v176_v52 }
 0x254   :  { %v313_v53 = vpop.eup %312 }
 0x255   :  { %v179_v55 = vmul.f32 %v313_v53, %v159_v35 }
 0x257   :  { %v188_v57 = vmul.f32 %v220_v54, %v179_v55 }
 0x258   :  { %v315_v58 = vpop.eup %314 }
 0x259   :  { %v180_v59 = vmul.f32 %v315_v58, %v160_v39  ;;  %v197_v60 = vadd.f32 %v221_v56, %v188_v57 }
 0x25b   :  { %v189_v61 = vmul.f32 %v220_v54, %v180_v59  ;;  %199 = vst [vmem:[#allocation7] sm:$0xff] %v197_v60 }
 0x25d   :  { %v198_v62 = vadd.f32 %v221_v56, %v189_v61 }
 0x25f   :  { %200 = vst [vmem:[#allocation7 + $0x8] sm:$0xff] %v198_v62 }
 0x260   :  { %371 = shalt.err (!%p368_p6)
}
 0x261   :  { %s372_s25 = scalar_lea.hbm %s482_s5, 256 }
 0x262   :  { %p373_p7 = scmp.ne.s32.totalorder %s482_s5, %s372_s25  ;;  %p376_p8 = scmp.lt.u32.totalorder %s372_s25, %s482_s5 }
 0x264   :  { %p378_p9 = pnand %p376_p8, %p373_p7 }
 0x266   :  { %381 = shalt.err (!%p378_p9)
}
 0x267   :  { %212 = dma.vmem_to_hbm [thread:$0]  %s207_s23, 256, %s482_s5, [#allocation4], %s389_s28, %s389_s28, %s390_s29  }
 0x268   :  { %386 = dma.done.wait [#allocation4], 256  }
 0x269   :  { %387 = vsyncadd [#allocation4], 4294967040 }
 0x26a   :  { %216 = vsyncpa [#allocation3], 1 }
 0x26b   :  { %217 = vsyncpa [#allocation6], 1 }
 0x26c   :  { %218 = vsyncpa [#allocation4], 1 }

</bundles_post_ra>
